<compile_context>
chip_gen: v5e
topology: v5e:2x2
jax: 0.10.0
libtpu: 0.0.40
codegen_flags: <defaults>
</compile_context>

<pallas_src>
import functools

import jax
import jax.numpy as jnp
from jax.experimental import pallas as pl
from jax.experimental.pallas import tpu as pltpu


def _attention_kernel(q_ref, k_ref, v_ref, m_ref, ctx_ref, attn_ref, *, mask_value):
    # Block shapes (one batch-block per grid step):
    #   q_ref   : (Bb, d_k)        k_ref    : (Bb, T, d_k)
    #   v_ref   : (Bb, T, d_v)     m_ref    : (Bb, T) int32 (nonzero = masked)
    #   ctx_ref : (Bb, d_v)        attn_ref : (Bb, T)
    k = k_ref[...]                                   # keep incoming dtype
    q = q_ref[...].astype(k.dtype)                   # tiny (Bb, d_k) cast

    # energy[b, t] = sum_d key[b, t, d] * query[b, d]
    # product in input dtype, f32 accumulation in the lane reduce.
    energy = jnp.sum(k * q[:, None, :], axis=-1, dtype=jnp.float32)     # (Bb, T)

    # mask padded positions (PyTorch: -1e9 for f32 energy, -inf otherwise).
    energy = jnp.where(m_ref[...] != 0, jnp.float32(mask_value), energy)

    # numerically-stable softmax along T (== F.softmax(energy, dim=1))
    e_max = jnp.max(energy, axis=-1, keepdims=True)
    p = jnp.exp(energy - e_max)
    denom = jnp.sum(p, axis=-1, keepdims=True)
    # exact reciprocal keeps 1e-5 parity with the f32 reference
    # (approx=True would be a valid micro-opt if VALU ever binds).
    attn = p * pl.reciprocal(denom, approx=False)                       # (Bb, T) f32

    # context[b, d] = sum_t attn[b, t] * value[b, t, d]
    v = v_ref[...]                                   # keep incoming dtype
    ctx = jnp.sum(v * attn.astype(v.dtype)[:, :, None], axis=1,
                  dtype=jnp.float32)                                    # (Bb, d_v)

    ctx_ref[...] = ctx.astype(ctx_ref.dtype)
    attn_ref[...] = attn.astype(attn_ref.dtype)


def _vmem_limit_bytes():
    """Generation-aware scoped-VMEM limit with headroom."""
    cap = 64 * 1024 * 1024                     # conservative fallback (v7x size)
    try:
        cap = int(pltpu.get_tpu_info().vmem_capacity_bytes)
    except Exception:
        pass
    # 8 MiB headroom; <= 96 MiB on 128 MiB parts (v5e/v6e), ~56 MiB on v7x.
    return max(32 * 1024 * 1024, min(cap - 8 * 1024 * 1024, 96 * 1024 * 1024))


def _choose_batch_block(B, T, d_k, d_v, itemsize, budget_bytes):
    """Largest batch block whose single-copy K+V slab fits `budget_bytes`.

    Prefers (a) a block that divides B (no ragged tail), (b) a 32-row granule
    (full-tile sublane layout for all operand dtypes), (c) >= 2 grid blocks for
    large B so the "parallel" batch axis can split across v7x's two cores.
    """
    per_b = max(1, T * (d_k + d_v) * itemsize)
    cap = max(1, budget_bytes // per_b)
    if B > 64:
        cap = min(cap, -(-B // 2))             # keep >= 2 blocks (megacore)
    if cap >= B:
        return B                               # single full-batch block
    if cap < 32:
        # Very long rows; fall back to an 8-row granule.
        # TODO(synk): flash-style T tiling needed when even this overflows VMEM.
        return max(8, (cap // 8) * 8)
    cand0 = (cap // 32) * 32
    for cand in range(cand0, 31, -32):         # prefer a divisor of B
        if B % cand == 0:
            return cand
    return cand0                               # ragged tail; Pallas masks OOB writes


def attention_forward(query, key, value, mask, *, b_blk=None):
    """JAX/Pallas equivalent of Attention.forward.

    query: (B, d_q), key: (B, T, d_k), value: (B, T, d_v), mask: (B, T) bool.
    Returns (context (B, d_v), attention (B, 1, T)).
    """
    assert key.shape[2] == query.shape[1]
    B, T, d_k = key.shape
    d_v = value.shape[2]

    energy_dtype = jnp.promote_types(key.dtype, query.dtype)
    attn_dtype = energy_dtype
    ctx_dtype = jnp.promote_types(attn_dtype, value.dtype)
    # PyTorch parity: -1e9 for float32 energy, -inf otherwise (a fully-masked
    # row then yields NaN exactly like the torch module).
    mask_value = -1e9 if energy_dtype == jnp.float32 else float("-inf")

    vmem_limit = _vmem_limit_bytes()
    if b_blk is None:
        itemsize = max(key.dtype.itemsize, value.dtype.itemsize)
        b_blk = _choose_batch_block(B, T, d_k, d_v, itemsize,
                                    budget_bytes=vmem_limit // 6)
    b_blk = int(min(max(b_blk, 1), B))
    n_blocks = pl.cdiv(B, b_blk)

    # int32 mask: sidesteps int8 (32,128) sublane-tiling questions; HBM cost
    # is negligible next to K/V traffic.
    m_i32 = mask.astype(jnp.int32)

    flops = 2 * B * T * d_k + 2 * B * T * d_v
    bytes_accessed = (
        key.size * key.dtype.itemsize
        + value.size * value.dtype.itemsize
        + query.size * query.dtype.itemsize
        + m_i32.size * 4
        + B * d_v * jnp.dtype(ctx_dtype).itemsize
        + B * T * jnp.dtype(attn_dtype).itemsize
    )

    kernel = functools.partial(_attention_kernel, mask_value=mask_value)

    ctx, attn = pl.pallas_call(
        kernel,
        out_shape=(
            jax.ShapeDtypeStruct((B, d_v), ctx_dtype),
            jax.ShapeDtypeStruct((B, T), attn_dtype),
        ),
        grid_spec=pltpu.PrefetchScalarGridSpec(
            num_scalar_prefetch=0,
            grid=(n_blocks,),
            in_specs=[
                pl.BlockSpec((b_blk, d_k), lambda b: (b, 0)),        # query
                pl.BlockSpec((b_blk, T, d_k), lambda b: (b, 0, 0)),  # key
                pl.BlockSpec((b_blk, T, d_v), lambda b: (b, 0, 0)),  # value
                pl.BlockSpec((b_blk, T), lambda b: (b, 0)),          # mask
            ],
            out_specs=[
                pl.BlockSpec((b_blk, d_v), lambda b: (b, 0)),        # context
                pl.BlockSpec((b_blk, T), lambda b: (b, 0)),          # attention
            ],
        ),
        compiler_params=pltpu.CompilerParams(
            dimension_semantics=("parallel",),
            vmem_limit_bytes=vmem_limit,
        ),
        cost_estimate=pl.CostEstimate(
            flops=flops,
            transcendentals=B * T,
            bytes_accessed=bytes_accessed,
        ),
    )(query, key, value, m_i32)

    return ctx, attn[:, None, :]               # (B, d_v), (B, 1, T)


def _reference(query, key, value, mask):
    # Pure-JAX reference mirroring the PyTorch forward exactly.
    energy = jnp.einsum("btd,bd->bt", key, query)                 # (B, T)
    energy = jnp.where(mask, jnp.float32(-1e9), energy)
    attention = jax.nn.softmax(energy, axis=1)[:, None, :]        # (B, 1, T)
    context = jnp.einsum("bqt,btd->bqd", attention, value)[:, 0]  # (B, d_v)
    return context, attention


def _run_case(rng, B, T, D, b_blk=None):
    k1, k2, k3, k4 = jax.random.split(rng, 4)
    query = jax.random.normal(k1, (B, D), dtype=jnp.float32)
    key = jax.random.normal(k2, (B, T, D), dtype=jnp.float32)
    value = jax.random.normal(k3, (B, T, D), dtype=jnp.float32)
    mask = jax.random.bernoulli(k4, p=0.25, shape=(B, T))
    mask = mask.at[:, 0].set(False)            # no fully-masked row

    context, attention = attention_forward(query, key, value, mask, b_blk=b_blk)
    jax.block_until_ready((context, attention))

    ref_ctx, ref_attn = _reference(query, key, value, mask)
    assert context.shape == (B, D)
    assert attention.shape == (B, 1, T)
    assert jnp.allclose(context, ref_ctx, atol=1e-5, rtol=1e-5)
    assert jnp.allclose(attention, ref_attn, atol=1e-5, rtol=1e-5)


if __name__ == "__main__":
    rng = jax.random.PRNGKey(0)
    r1, r2 = jax.random.split(rng)

    # small module-consistent shapes: single full-batch block
    _run_case(r1, B=2, T=8, D=32)
    # ragged-tail path: B not a multiple of the block (no wrapper padding)
    _run_case(r2, B=12, T=8, D=32, b_blk=8)

    print("KERNEL_OK")
</pallas_src>

<mosaic_0001>
module attributes {stable_mosaic.version = 11 : i64} {
  func.func @_attention_kernel(%arg0: i32, %arg1: memref<2x32xf32, #tpu.memory_space<vmem>>, %arg2: memref<2x8x32xf32, #tpu.memory_space<vmem>>, %arg3: memref<2x8x32xf32, #tpu.memory_space<vmem>>, %arg4: memref<2x8xi32, #tpu.memory_space<vmem>>, %arg5: memref<2x32xf32, #tpu.memory_space<vmem>>, %arg6: memref<2x8xf32, #tpu.memory_space<vmem>>) attributes {dimension_semantics = [#tpu.dimension_semantics<parallel>], iteration_bounds = array<i64: 1>, scalar_prefetch = 0 : i64, scratch_operands = 0 : i64, tpu.core_type = #tpu.core_type<tc>, window_params = [{transform_indices = @transform_0, window_bounds = array<i64: 2, 32>}, {transform_indices = @transform_1, window_bounds = array<i64: 2, 8, 32>}, {transform_indices = @transform_2, window_bounds = array<i64: 2, 8, 32>}, {transform_indices = @transform_3, window_bounds = array<i64: 2, 8>}, {transform_indices = @transform_4, window_bounds = array<i64: 2, 32>}, {transform_indices = @transform_5, window_bounds = array<i64: 2, 8>}]} {
    %c0 = arith.constant 0 : index
    %c0_0 = arith.constant 0 : index
    %c0_1 = arith.constant 0 : index
    %0 = vector.load %arg2[%c0, %c0_0, %c0_1] : memref<2x8x32xf32, #tpu.memory_space<vmem>>, vector<2x8x32xf32>
    %c0_2 = arith.constant 0 : index
    %c0_3 = arith.constant 0 : index
    %1 = vector.load %arg1[%c0_2, %c0_3] : memref<2x32xf32, #tpu.memory_space<vmem>>, vector<2x32xf32>
    %2 = vector.shape_cast %1 : vector<2x32xf32> to vector<2x1x32xf32>
    %3 = vector.broadcast %2 : vector<2x1x32xf32> to vector<2x8x32xf32>
    %4 = arith.mulf %0, %3 : vector<2x8x32xf32>
    %cst = arith.constant dense<0.000000e+00> : vector<2x8xf32>
    %5 = vector.multi_reduction <add>, %4, %cst [2] : vector<2x8x32xf32> to vector<2x8xf32>
    %c0_4 = arith.constant 0 : index
    %c0_5 = arith.constant 0 : index
    %6 = vector.load %arg4[%c0_4, %c0_5] : memref<2x8xi32, #tpu.memory_space<vmem>>, vector<2x8xi32>
    %c0_i32 = arith.constant 0 : i32
    %7 = vector.broadcast %c0_i32 : i32 to vector<2x8xi32>
    %8 = arith.cmpi ne, %6, %7 : vector<2x8xi32>
    %cst_6 = arith.constant -1.000000e+09 : f32
    %9 = vector.broadcast %cst_6 : f32 to vector<2x8xf32>
    %10 = arith.select %8, %9, %5 : vector<2x8xi1>, vector<2x8xf32>
    %cst_7 = arith.constant dense<0xFF800000> : vector<2xf32>
    %11 = vector.multi_reduction <maximumf>, %10, %cst_7 [1] : vector<2x8xf32> to vector<2xf32>
    %12 = vector.shape_cast %11 : vector<2xf32> to vector<2x1xf32>
    %13 = vector.broadcast %12 : vector<2x1xf32> to vector<2x8xf32>
    %14 = arith.subf %10, %13 : vector<2x8xf32>
    %15 = math.exp %14 : vector<2x8xf32>
    %cst_8 = arith.constant dense<0.000000e+00> : vector<2xf32>
    %16 = vector.multi_reduction <add>, %15, %cst_8 [1] : vector<2x8xf32> to vector<2xf32>
    %17 = vector.shape_cast %16 : vector<2xf32> to vector<2x1xf32>
    %18 = tpu.reciprocal %17 : vector<2x1xf32> -> vector<2x1xf32>
    %19 = vector.broadcast %18 : vector<2x1xf32> to vector<2x8xf32>
    %20 = arith.mulf %15, %19 : vector<2x8xf32>
    %c0_9 = arith.constant 0 : index
    %c0_10 = arith.constant 0 : index
    %c0_11 = arith.constant 0 : index
    %21 = vector.load %arg3[%c0_9, %c0_10, %c0_11] : memref<2x8x32xf32, #tpu.memory_space<vmem>>, vector<2x8x32xf32>
    %22 = vector.shape_cast %20 : vector<2x8xf32> to vector<2x8x1xf32>
    %23 = vector.broadcast %22 : vector<2x8x1xf32> to vector<2x8x32xf32>
    %24 = arith.mulf %21, %23 : vector<2x8x32xf32>
    %cst_12 = arith.constant dense<0.000000e+00> : vector<2x32xf32>
    %25 = vector.multi_reduction <add>, %24, %cst_12 [1] : vector<2x8x32xf32> to vector<2x32xf32>
    %c0_13 = arith.constant 0 : index
    %c0_14 = arith.constant 0 : index
    %26 = vector.load %arg5[%c0_13, %c0_14] : memref<2x32xf32, #tpu.memory_space<vmem>>, vector<2x32xf32>
    tpu.vector_store %arg5[%c0_13, %c0_14], %25 {strides = array<i32>} : memref<2x32xf32, #tpu.memory_space<vmem>>, vector<2x32xf32>,
    %c0_15 = arith.constant 0 : index
    %c0_16 = arith.constant 0 : index
    %27 = vector.load %arg6[%c0_15, %c0_16] : memref<2x8xf32, #tpu.memory_space<vmem>>, vector<2x8xf32>
    tpu.vector_store %arg6[%c0_15, %c0_16], %20 {strides = array<i32>} : memref<2x8xf32, #tpu.memory_space<vmem>>, vector<2x8xf32>,
    return
  }
  func.func @transform_0(%arg0: i32) -> (i32, i32) {
    %c0_i32 = arith.constant 0 : i32
    %c0_i32_0 = arith.constant 0 : i32
    return %arg0, %c0_i32 : i32, i32
  }
  func.func @transform_1(%arg0: i32) -> (i32, i32, i32) {
    %c0_i32 = arith.constant 0 : i32
    %c0_i32_0 = arith.constant 0 : i32
    %c0_i32_1 = arith.constant 0 : i32
    return %arg0, %c0_i32, %c0_i32_0 : i32, i32, i32
  }
  func.func @transform_2(%arg0: i32) -> (i32, i32, i32) {
    %c0_i32 = arith.constant 0 : i32
    %c0_i32_0 = arith.constant 0 : i32
    %c0_i32_1 = arith.constant 0 : i32
    return %arg0, %c0_i32, %c0_i32_0 : i32, i32, i32
  }
  func.func @transform_3(%arg0: i32) -> (i32, i32) {
    %c0_i32 = arith.constant 0 : i32
    %c0_i32_0 = arith.constant 0 : i32
    return %arg0, %c0_i32 : i32, i32
  }
  func.func @transform_4(%arg0: i32) -> (i32, i32) {
    %c0_i32 = arith.constant 0 : i32
    %c0_i32_0 = arith.constant 0 : i32
    return %arg0, %c0_i32 : i32, i32
  }
  func.func @transform_5(%arg0: i32) -> (i32, i32) {
    %c0_i32 = arith.constant 0 : i32
    %c0_i32_0 = arith.constant 0 : i32
    return %arg0, %c0_i32 : i32, i32
  }
}

</mosaic_0001>

<bundles_post_ra>
// kernel: tpu_custom_call.1
= control target key start
LH: loop header
LB: loop body
LE: loop exit
PB: predicated region body
PF: predicated region fallthrough
CT: control target
= control target key end

     0   :  { %11 = vsyncpa [#allocation3], 0  ;;  %s399_s0 = inlined_call_operand.hbm [shape: f32[2,32], index: 0, kind: input, shape index: {}]   ;;  %s400_s1 = inlined_call_operand.hbm [shape: f32[2,8,32], index: 1, kind: input, shape index: {}]   ;;  %s401_s2 = inlined_call_operand.hbm [shape: f32[2,8,32], index: 2, kind: input, shape index: {}]   ;;  %s402_s3 = inlined_call_operand.vmem [shape: s32[2,8], index: 3, kind: input, shape index: {}]   ;;  %s403_s4 = inlined_call_operand.hbm [shape: f32[2,32], index: 4, kind: output, shape index: {0}]   ;;  %s404_s5 = inlined_call_operand.hbm [shape: f32[2,8], index: 5, kind: output, shape index: {1}]  }
   0x1   :  { %12 = vsyncpa [#allocation6], 0 }
   0x2   :  { %13 = vsyncpa [#allocation4], 0  ;;  %s30_s20 = sshll.u32 %s400_s1, 4  ;;  %s31_s20 = int_to_ptr.hbm [resolvable:$true] %s30_s20 }
   0x3   :  { %14 = vsyncpa [#allocation10], 0  ;;  %s335_s21 = smov [#allocation5]   ;;  %s20_s25 = sshll.u32 %s399_s0, 4  ;;  %s21_s25 = int_to_ptr.hbm [resolvable:$true] %s20_s25 }
   0x4   :  { %s32_s22 = sshll.u32 %s335_s21, 4  ;;  %s336_s26 = smov 128   ;;  %s33_s22 = int_to_ptr.vmem [resolvable:$true] %s32_s22 }
   0x5   :  { %s337_s27 = smov 8   ;;  %s338_s28 = smov [#allocation2]  }
   0x6   :  { %38 = dma.hbm_to_vmem [thread:$0]  %s31_s20, 256, %s33_s22, [#allocation6], %s336_s26, %s336_s26, %s337_s27  }
   0x7   :  { %s22_s29 = sshll.u32 %s338_s28, 4  ;;  %s43_s7 = sshll.u32 %s401_s2, 4  ;;  %s23_s29 = int_to_ptr.vmem [resolvable:$true] %s22_s29  ;;  %s44_s7 = int_to_ptr.hbm [resolvable:$true] %s43_s7 }
   0x8   :  { %25 = dma.hbm_to_vmem [thread:$0]  %s21_s25, 32, %s23_s29, [#allocation3]  }
   0x9   :  { %s339_s1 = smov [#allocation7]  }
   0xa   :  { %s45_s8 = sshll.u32 %s339_s1, 4  ;;  %s46_s8 = int_to_ptr.vmem [resolvable:$true] %s45_s8 }
   0xb   :  { %51 = dma.hbm_to_vmem [thread:$0]  %s44_s7, 256, %s46_s8, [#allocation6], %s336_s26, %s336_s26, %s337_s27  }
   0xc   :  { %327 = dma.done.wait [#allocation3], 32  }
   0xd   :  { %328 = vsyncadd [#allocation3], 4294967264 }
   0xe   :  { %329 = dma.done.wait [#allocation6], 512  }
   0xf   :  { %330 = vsyncadd [#allocation6], 4294966784  ;;  %v66_v0 = vld [vmem:[#allocation5] sm:$0xff]  ;;  %v68_v1 = vld [vmem:[#allocation2] sm:$0x3]  ;;  %vm77_vm0 = vcmask 261120   ;;  %v88_v11 = vlaneseq }
  0x10   :  { %v71_v2 = vperm.slane %v68_v1, 0  ;;  %v70_v3 = vrot.slane %v68_v1, 1  ;;  %v67_v6 = vld [vmem:[#allocation5 + $0x8] sm:$0xff]  ;;  %v84_v13 = vld [vmem:[%s402_s3] sm:$0x3]  ;;  %vm92_vm1 = vcmask 1041409  }
  0x11   :  { %v89_v12 = vand.u32 127, %v88_v11  ;;  %vm85_vm2 = vcmp.ne.s32.totalorder %v84_v13, 0  ;;  %vm96_vm3 = vcmask 58368   ;;  %v125_v25 = vshrl.u32 %v88_v11, 7  ;;  %s340_s3 = smov [#allocation9]   ;;  %s178_s12 = sshll.u32 %s404_s5, 4  ;;  %s179_s12 = int_to_ptr.hbm [resolvable:$true] %s178_s12 }
  0x12   :  { %v75_v4 = vmul.f32 %v71_v2, %v66_v0  ;;  %v72_v5 = vperm.slane %v70_v3, 0  ;;  %s176_s9 = sshll.u32 %s340_s3, 4  ;;  %v121_v40 = vld [vmem:[#allocation7] sm:$0xff]  ;;  %v122_v46 = vld [vmem:[#allocation7 + $0x8] sm:$0xff]  ;;  %s341_s5 = smov [#allocation8]   ;;  %vm157_vm8 = vcmask 254976   ;;  %s177_s9 = int_to_ptr.vmem [resolvable:$true] %s176_s9 }
  0x13   :  { %201 = vset.pattern.permute.xlu2 %v125_v25  ;;  %202 = vset.pattern.permute.xlu0 %v125_v25  ;;  %s165_s13 = sshll.u32 %s341_s5, 4  ;;  %s167_s16 = sshll.u32 %s403_s4, 4  ;;  %s166_s13 = int_to_ptr.vmem [resolvable:$true] %s165_s13  ;;  %s168_s16 = int_to_ptr.hbm [resolvable:$true] %s167_s16 }
  0x14   :  { %v78_v7 = vsel %vm77_vm0, %v75_v4, 0.0  ;;  %v76_v8 = vmul.f32 %v72_v5, %v67_v6 }
  0x15   :  { %79 = vadd.xlane.f32.xlu0 %v78_v7 }
  0x16   :  { %v81_v9 = vsel %vm77_vm0, %v76_v8, 0.0 }
  0x1d   :  { %82 = vadd.xlane.f32.xlu0 %v81_v9 }
  0x88   :  { %v80_v10 = vpop.xlane.xlu0 %79 }
  0x89   :  { %v90_v15 = vperm.slane %v80_v10, %v89_v12 }
  0x90   :  { %v83_v14 = vpop.xlane.xlu0 %82 }
  0x91   :  { %v91_v16 = vperm.slane %v83_v14, %v89_v12 }
  0x93   :  { %v93_v17 = vsel %vm92_vm1, %v91_v16, %v90_v15 }
  0x94   :  { %v95_v18 = vsel %vm85_vm2, -1e+09, %v93_v17 }
  0x95   :  { %v97_v19 = vsel %vm96_vm3, %v95_v18, -inf }
  0x96   :  { %98 = vmax.xlane.f32.xlu1 %v97_v19 }
 0x109   :  { %v99_v20 = vpop.xlane.xlu1 %98 }
 0x10a   :  { %v100_v21 = vsub.f32 %v95_v18, %v99_v20 }
 0x10c   :  { %v101_v22 = vmul.f32 1.442695, %v100_v21 }
 0x10e   :  { %203 = vpow2.f32 %v101_v22 }
 0x114   :  { %v204_v23 = vpop.eup %203 }
 0x115   :  { %v103_v24 = vsel %vm96_vm3, %v204_v23, 0.0 }
 0x116   :  { %104 = vadd.xlane.f32.xlu1 %v103_v24 }
 0x189   :  { %v105_v26 = vpop.xlane.xlu1 %104 }
 0x18a   :  { %205 = vrcp.f32 %v105_v26  ;;  %v117_v30 = vand.u32 2147483648, %v105_v26  ;;  %v115_v32 = vand.u32 2147483647, %v105_v26  ;;  %vm111_vm5 = vweird.f32 %v105_v26 }
 0x18c   :  { %v118_v34 = vor.u32 1.1754944e-38, %v117_v30  ;;  %vm116_vm7 = vcmp.eq.f32.partialorder %v115_v32, 8.507059e+37 }
 0x190   :  { %v206_v27 = vpop.eup %205 }
 0x191   :  { %v107_v28 = vmul.f32 %v206_v27, %v105_v26  ;;  %vm112_vm4 = vweird.f32 %v206_v27 }
 0x192   :  { %vm113_vm6 = vmor %vm111_vm5, %vm112_vm4 }
 0x193   :  { %v108_v29 = vsub.f32 1.0, %v107_v28 }
 0x195   :  { %v109_v31 = vmul.f32 %v206_v27, %v108_v29 }
 0x197   :  { %v110_v33 = vadd.f32 %v206_v27, %v109_v31 }
 0x199   :  { %v114_v35 = vsel %vm113_vm6, %v206_v27, %v110_v33 }
 0x19a   :  { %v119_v36 = vsel %vm116_vm7, %v118_v34, %v114_v35 }
 0x19b   :  { %v120_v37 = vmul.f32 %v204_v23, %v119_v36 }
 0x19d   :  { %v123_v38 = vperm.slane %v120_v37, 0  ;;  %159 = vst.msk [vmem:[#allocation9] sm:$0x3] %vm96_vm3, %v120_v37  ;;  %v130_v39 = vperm.slane %v120_v37, 1 }
 0x19e   :  { %181 = dma.vmem_to_hbm [thread:$0]  %s177_s9, 32, %s179_s12, [#allocation10]  }
 0x19f   :  { %128 = vperm.xlu2 %201, %v123_v38  }
 0x1a7   :  { %135 = vperm.xlu2 %201, %v130_v39  }
 0x1f9   :  { %v129_v41 = vpop.permute.xlu2 %128 }
 0x1fa   :  { %v137_v42 = vmul.f32 %v129_v41, %v121_v40 }
 0x1fc   :  { %v139_v43 = vsel %vm77_vm0, %v137_v42, 0.0 }
 0x1fd   :  { %v140_v44 = vrot.slane %v139_v43, 4 }
 0x1ff   :  { %v141_v45 = vadd.f32 %v140_v44, %v139_v43 }
 0x201   :  { %v136_v47 = vpop.permute.xlu2 %135  ;;  %v142_v49 = vrot.slane %v141_v45, 2 }
 0x202   :  { %v138_v48 = vmul.f32 %v136_v47, %v122_v46 }
 0x203   :  { %v143_v52 = vadd.f32 %v142_v49, %v141_v45 }
 0x204   :  { %v146_v50 = vsel %vm77_vm0, %v138_v48, 0.0 }
 0x205   :  { %v147_v51 = vrot.slane %v146_v50, 4  ;;  %v144_v55 = vrot.slane %v143_v52, 1 }
 0x207   :  { %v148_v53 = vadd.f32 %v147_v51, %v146_v50  ;;  %v145_v58 = vadd.f32 %v144_v55, %v143_v52 }
 0x209   :  { %v149_v54 = vrot.slane %v148_v53, 2 }
 0x20b   :  { %v150_v56 = vadd.f32 %v149_v54, %v148_v53 }
 0x20d   :  { %v151_v57 = vrot.slane %v150_v56, 1 }
 0x20f   :  { %v152_v59 = vadd.f32 %v151_v57, %v150_v56 }
 0x211   :  { %v155_v60 = vsel %vm92_vm1, %v152_v59, %v145_v58 }
 0x212   :  { %158 = vst.msk [vmem:[#allocation8] sm:$0x3] %vm157_vm8, %v155_v60 }
 0x213   :  { %170 = dma.vmem_to_hbm [thread:$0]  %s166_s13, 32, %s168_s16, [#allocation4]  }
 0x214   :  { %331 = dma.done.wait [#allocation4], 32  }
 0x215   :  { %332 = vsyncadd [#allocation4], 4294967264 }
 0x216   :  { %333 = dma.done.wait [#allocation10], 32  }
 0x217   :  { %334 = vsyncadd [#allocation10], 4294967264 }
 0x218   :  { %190 = vsyncpa [#allocation3], 1 }
 0x219   :  { %191 = vsyncpa [#allocation6], 1 }
 0x21a   :  { %192 = vsyncpa [#allocation4], 1 }
 0x21b   :  { %193 = vsyncpa [#allocation10], 1 }

</bundles_post_ra>
